<compile_context>
chip_gen: v6e
topology: v6e:2x2x1
jax: 0.10.0
libtpu: 0.0.40
codegen_flags: <defaults>
</compile_context>

<pallas_src>
import functools
import math

import jax
import jax.numpy as jnp
from jax import lax
from jax.experimental import pallas as pl
from jax.experimental.pallas import tpu as pltpu


def basic_block_kernel(x_ref, w1_ref, w2_ref, out_ref, *, H):
    # x_ref  : (N*H, W*Cin)                 bf16 fused input activations
    # w1_ref : (3*W*Cin, W*Cm)              bf16 wide-K banded conv1 weights
    # w2_ref : (K2pad,   W*Cout)            bf16 wide-K banded conv2 weights ++ 1x1 shortcut ++ pad
    # out_ref: (N*H, W*Cout)                f32 fused output (lane-dense, 128 lanes)
    R, Lin = x_ref.shape
    Lmid = w1_ref.shape[1]
    K2 = w2_ref.shape[0]

    x32 = x_ref[...].astype(jnp.float32)

    # Boundary masks: rows whose dy=-1 / dy=+1 source falls outside the image.
    row = lax.broadcasted_iota(jnp.int32, (R, 1), 0)
    top = (row % H) == 0          # h == 0      -> no row h-1
    bot = (row % H) == (H - 1)    # h == H-1    -> no row h+1

    # Row-shifted copies via XLU roll + VPU select (no VMEM temporaries).
    # pltpu.roll follows jnp.roll semantics: out[r] = in[(r - shift) % R].
    x_dn = jnp.where(top, 0.0, pltpu.roll(x32, 1, 0))       # row r <- x[r-1]
    x_up = jnp.where(bot, 0.0, pltpu.roll(x32, R - 1, 0))   # row r <- x[r+1]

    # ---- conv1 (3x3, pad 1, no bias) + ReLU: ONE wide-K MXU matmul ----
    lhs1 = jnp.concatenate([x_dn, x32, x_up], axis=1).astype(jnp.bfloat16)  # (R, 3*Lin)
    acc1 = jnp.dot(lhs1, w1_ref[...], preferred_element_type=jnp.float32)
    h1 = jnp.maximum(acc1, 0.0)                                             # (R, Lmid) f32

    h1_dn = jnp.where(top, 0.0, pltpu.roll(h1, 1, 0))
    h1_up = jnp.where(bot, 0.0, pltpu.roll(h1, R - 1, 0))

    # ---- conv2 (3x3, pad 1) + 1x1 projection shortcut: ONE wide-K MXU matmul ----
    pad = K2 - (3 * Lmid + Lin)
    pieces = [h1_dn, h1, h1_up, x32]
    if pad:
        pieces.append(jnp.zeros((R, pad), jnp.float32))
    lhs2 = jnp.concatenate(pieces, axis=1).astype(jnp.bfloat16)             # (R, K2pad)
    acc2 = jnp.dot(lhs2, w2_ref[...], preferred_element_type=jnp.float32)

    # ---- residual ReLU, unmasked full-lane store ----
    out_ref[...] = jnp.maximum(acc2, 0.0)


def _conv3x3_banded_weights(w, W):
    """w: (3,3,Ci,Co) HWIO -> (3, W*Ci, W*Co): one banded block-Toeplitz matrix per dy.

    band[dy][s*Ci+ci, o*Co+co] = w[dy, dx, ci, co] where s = o + dx - 1 (zero outside
    the band): the dx/ci contraction of a pad-1 conv along W becomes one matmul over the
    fused (W*C) lane axis; W-boundary zero padding is encoded by the missing band entries.
    """
    KH, KW, Ci, Co = w.shape
    dx = jnp.arange(KW)[:, None, None]
    s = jnp.arange(W)[None, :, None]
    o = jnp.arange(W)[None, None, :]
    ind = (s == o + dx - (KW // 2)).astype(w.dtype)        # (KW, W, W)
    band = jnp.einsum("dso,ydic->ysioc", ind, w)           # (KH, W, Ci, W, Co)
    return band.reshape(KH, W * Ci, W * Co)


def _conv1x1_block_diag(ws, W):
    """ws: (Ci, Co) -> (W*Ci, W*Co) block-diagonal (per-pixel 1x1 projection)."""
    Ci, Co = ws.shape
    eye = jnp.eye(W, dtype=ws.dtype)
    return jnp.einsum("so,ic->sioc", eye, ws).reshape(W * Ci, W * Co)


def basic_block_tiny(x, w1, w2, ws, stride=1):
    """x: (N,H,W,Cin) NHWC; w1:(3,3,Cin,Cm); w2:(3,3,Cm,Cout); ws:(Cin,Cout)."""
    # TODO(synk): stride > 1 spatial downsampling not implemented in the kernel;
    # the block is instantiated here with stride=1 (projection shortcut only).
    assert stride == 1
    N, H, W, Cin = x.shape
    Cm = w1.shape[-1]
    Cout = w2.shape[-1]

    # TODO(synk): the banded block-Toeplitz trick is O(W^2 * C^2) in weight size; gate it
    # on W*C <= ~256 (here 64/128) and tile W / fall back to per-dx taps at production
    # ResNet shapes, or it blows VMEM (first on v7x's 64 MiB).

    # Host-side wide-K weight construction (exact: indicator einsum copies weight values).
    w1_cat = _conv3x3_banded_weights(w1, W).reshape(3 * W * Cin, W * Cm)      # K = 192
    w2_band = _conv3x3_banded_weights(w2, W).reshape(3 * W * Cm, W * Cout)
    ws_diag = _conv1x1_block_diag(ws, W)
    K2 = 3 * W * Cm + W * Cin                                                 # 448
    K2p = pl.cdiv(K2, 128) * 128                                              # 512
    parts = [w2_band, ws_diag]
    if K2p > K2:
        parts.append(jnp.zeros((K2p - K2, W * Cout), w2_band.dtype))
    w2_cat = jnp.concatenate(parts, axis=0)

    # bf16 at the pallas_call boundary (halve DMA traffic, native MXU rate).
    x_fused = x.reshape(N * H, W * Cin).astype(jnp.bfloat16)
    w1_cat = w1_cat.astype(jnp.bfloat16)
    w2_cat = w2_cat.astype(jnp.bfloat16)

    kernel = functools.partial(basic_block_kernel, H=H)
    out_fused = pl.pallas_call(
        kernel,
        out_shape=jax.ShapeDtypeStruct((N * H, W * Cout), jnp.float32),
        in_specs=[pl.BlockSpec(memory_space=pltpu.MemorySpace.VMEM)] * 3,
        out_specs=pl.BlockSpec(memory_space=pltpu.MemorySpace.VMEM),
    )(x_fused, w1_cat, w2_cat)
    # TODO(synk): beyond demo shapes, add a grid over N*H row tiles (M=256 on v6e/v7x,
    # 128 on v5e) with constant-index weight specs (weights DMA'd once, VMEM-resident),
    # +-1 halo rows for the dy taps, dimension_semantics=("parallel",) for megacore /
    # v7x dual-TC sharding, and an explicit vmem_limit_bytes for v7x's 64 MiB.
    return out_fused.reshape(N, H, W, Cout)


def basic_block_reference(x, w1, w2, ws):
    """Pure-JAX reference matching the kernel's bf16-input / f32-accumulate numerics."""
    xb = x.astype(jnp.bfloat16)
    w1b = w1.astype(jnp.bfloat16)
    w2b = w2.astype(jnp.bfloat16)
    wsb = ws.astype(jnp.bfloat16)
    dn1 = lax.conv_dimension_numbers(x.shape, w1.shape, ("NHWC", "HWIO", "NHWC"))
    h1 = lax.conv_general_dilated(xb, w1b, (1, 1), ((1, 1), (1, 1)),
                                  dimension_numbers=dn1,
                                  preferred_element_type=jnp.float32)
    h1 = jnp.maximum(h1, 0.0).astype(jnp.bfloat16)
    dn2 = lax.conv_dimension_numbers(h1.shape, w2.shape, ("NHWC", "HWIO", "NHWC"))
    out = lax.conv_general_dilated(h1, w2b, (1, 1), ((1, 1), (1, 1)),
                                   dimension_numbers=dn2,
                                   preferred_element_type=jnp.float32)
    sc = jnp.einsum("nhwc,co->nhwo", xb, wsb, preferred_element_type=jnp.float32)
    return jnp.maximum(out + sc, 0.0)


if __name__ == "__main__":
    key = jax.random.PRNGKey(0)
    N, H, W = 2, 16, 16
    in_planes, planes = 4, 8  # in_planes != planes -> projection shortcut path

    k_x, k_w1, k_w2, k_ws = jax.random.split(key, 4)
    x = jax.random.normal(k_x, (N, H, W, in_planes), jnp.float32)

    # Deterministic init mimicking PyTorch Conv2d default (U[-1/sqrt(fan_in), +1/sqrt(fan_in)])
    b1 = 1.0 / math.sqrt(in_planes * 3 * 3)
    w1 = jax.random.uniform(k_w1, (3, 3, in_planes, planes), jnp.float32, -b1, b1)
    b2 = 1.0 / math.sqrt(planes * 3 * 3)
    w2 = jax.random.uniform(k_w2, (3, 3, planes, planes), jnp.float32, -b2, b2)
    bs = 1.0 / math.sqrt(in_planes * 1 * 1)
    ws = jax.random.uniform(k_ws, (in_planes, planes), jnp.float32, -bs, bs)

    out = basic_block_tiny(x, w1, w2, ws, stride=1)
    out = jax.block_until_ready(out)

    ref = basic_block_reference(x, w1, w2, ws)
    assert out.shape == (N, H, W, planes)
    assert jnp.allclose(out, ref, atol=2e-3, rtol=2e-3), "mismatch vs JAX reference"
    print("KERNEL_OK")
</pallas_src>

<mosaic_0001>
module attributes {stable_mosaic.version = 11 : i64} {
  func.func @basic_block_kernel(%arg0: memref<32x64xbf16, #tpu.memory_space<vmem>>, %arg1: memref<192x128xbf16, #tpu.memory_space<vmem>>, %arg2: memref<512x128xbf16, #tpu.memory_space<vmem>>, %arg3: memref<32x128xf32, #tpu.memory_space<vmem>>) attributes {dimension_semantics = [], scalar_prefetch = 0 : i64, scratch_operands = 0 : i64, tpu.core_type = #tpu.core_type<tc>} {
    %c0 = arith.constant 0 : index
    %c0_0 = arith.constant 0 : index
    %0 = vector.load %arg0[%c0, %c0_0] : memref<32x64xbf16, #tpu.memory_space<vmem>>, vector<32x64xbf16>
    %1 = arith.extf %0 : vector<32x64xbf16> to vector<32x64xf32>
    %2 = tpu.iota {dimensions = array<i32: 0>} : vector<32x1xi32>
    %c16_i32 = arith.constant 16 : i32
    %c0_i32 = arith.constant 0 : i32
    %3 = arith.cmpi eq, %c16_i32, %c0_i32 : i32
    %c1_i32 = arith.constant 1 : i32
    %4 = arith.select %3, %c1_i32, %c16_i32 : i32
    %5 = vector.broadcast %4 : i32 to vector<32x1xi32>
    %6 = arith.remsi %2, %5 : vector<32x1xi32>
    %c0_i32_1 = arith.constant 0 : i32
    %7 = vector.broadcast %c0_i32_1 : i32 to vector<32x1xi32>
    %8 = arith.cmpi ne, %6, %7 : vector<32x1xi32>
    %c0_i32_2 = arith.constant 0 : i32
    %9 = vector.broadcast %c0_i32_2 : i32 to vector<32x1xi32>
    %10 = arith.cmpi slt, %6, %9 : vector<32x1xi32>
    %c0_i32_3 = arith.constant 0 : i32
    %11 = arith.cmpi slt, %4, %c0_i32_3 : i32
    %12 = vector.broadcast %11 : i1 to vector<32x1xi1>
    %13 = vector.broadcast %12 : vector<32x1xi1> to vector<32x1xi1>
    %14 = arith.xori %10, %13 : vector<32x1xi1>
    %15 = arith.andi %14, %8 : vector<32x1xi1>
    %16 = vector.broadcast %4 : i32 to vector<32x1xi32>
    %17 = arith.addi %6, %16 : vector<32x1xi32>
    %18 = arith.select %15, %17, %6 : vector<32x1xi1>, vector<32x1xi32>
    %c0_i32_4 = arith.constant 0 : i32
    %19 = vector.broadcast %c0_i32_4 : i32 to vector<32x1xi32>
    %20 = arith.cmpi eq, %18, %19 : vector<32x1xi32>
    %c16_i32_5 = arith.constant 16 : i32
    %c0_i32_6 = arith.constant 0 : i32
    %21 = arith.cmpi eq, %c16_i32_5, %c0_i32_6 : i32
    %c1_i32_7 = arith.constant 1 : i32
    %22 = arith.select %21, %c1_i32_7, %c16_i32_5 : i32
    %23 = vector.broadcast %22 : i32 to vector<32x1xi32>
    %24 = arith.remsi %2, %23 : vector<32x1xi32>
    %c0_i32_8 = arith.constant 0 : i32
    %25 = vector.broadcast %c0_i32_8 : i32 to vector<32x1xi32>
    %26 = arith.cmpi ne, %24, %25 : vector<32x1xi32>
    %c0_i32_9 = arith.constant 0 : i32
    %27 = vector.broadcast %c0_i32_9 : i32 to vector<32x1xi32>
    %28 = arith.cmpi slt, %24, %27 : vector<32x1xi32>
    %c0_i32_10 = arith.constant 0 : i32
    %29 = arith.cmpi slt, %22, %c0_i32_10 : i32
    %30 = vector.broadcast %29 : i1 to vector<32x1xi1>
    %31 = vector.broadcast %30 : vector<32x1xi1> to vector<32x1xi1>
    %32 = arith.xori %28, %31 : vector<32x1xi1>
    %33 = arith.andi %32, %26 : vector<32x1xi1>
    %34 = vector.broadcast %22 : i32 to vector<32x1xi32>
    %35 = arith.addi %24, %34 : vector<32x1xi32>
    %36 = arith.select %33, %35, %24 : vector<32x1xi1>, vector<32x1xi32>
    %c15_i32 = arith.constant 15 : i32
    %37 = vector.broadcast %c15_i32 : i32 to vector<32x1xi32>
    %38 = arith.cmpi eq, %36, %37 : vector<32x1xi32>
    %c1_i32_11 = arith.constant 1 : i32
    %39 = tpu.dynamic_rotate %1 by %c1_i32_11 dim 0 : vector<32x64xf32>, i32 -> vector<32x64xf32>
    %cst = arith.constant 0.000000e+00 : f32
    %40 = vector.shape_cast %20 : vector<32x1xi1> to vector<32x1xi1>
    %41 = vector.broadcast %40 : vector<32x1xi1> to vector<32x64xi1>
    %42 = vector.broadcast %cst : f32 to vector<32x64xf32>
    %43 = arith.select %41, %42, %39 : vector<32x64xi1>, vector<32x64xf32>
    %c31_i32 = arith.constant 31 : i32
    %44 = tpu.dynamic_rotate %1 by %c31_i32 dim 0 : vector<32x64xf32>, i32 -> vector<32x64xf32>
    %cst_12 = arith.constant 0.000000e+00 : f32
    %45 = vector.shape_cast %38 : vector<32x1xi1> to vector<32x1xi1>
    %46 = vector.broadcast %45 : vector<32x1xi1> to vector<32x64xi1>
    %47 = vector.broadcast %cst_12 : f32 to vector<32x64xf32>
    %48 = arith.select %46, %47, %44 : vector<32x64xi1>, vector<32x64xf32>
    %49 = tpu.concatenate %43, %1, %48 in 1 : vector<32x64xf32>, vector<32x64xf32>, vector<32x64xf32> -> vector<32x192xf32>
    %50 = arith.truncf %49 : vector<32x192xf32> to vector<32x192xbf16>
    %c0_13 = arith.constant 0 : index
    %c0_14 = arith.constant 0 : index
    %51 = vector.load %arg1[%c0_13, %c0_14] : memref<192x128xbf16, #tpu.memory_space<vmem>>, vector<192x128xbf16>
    %cst_15 = arith.constant dense<0.000000e+00> : vector<32x128xf32>
    %52 = tpu.matmul %50, %51, %cst_15 {dimension_numbers = #tpu.dot_dimension_numbers<[1], [0], [0], [1], [0, 0, 1, 1], [], []>} : vector<32x192xbf16>, vector<192x128xbf16>, vector<32x128xf32> -> vector<32x128xf32>
    %cst_16 = arith.constant 0.000000e+00 : f32
    %53 = vector.broadcast %cst_16 : f32 to vector<32x128xf32>
    %54 = arith.maximumf %52, %53 : vector<32x128xf32>
    %c1_i32_17 = arith.constant 1 : i32
    %55 = tpu.dynamic_rotate %54 by %c1_i32_17 dim 0 : vector<32x128xf32>, i32 -> vector<32x128xf32>
    %cst_18 = arith.constant 0.000000e+00 : f32
    %56 = vector.shape_cast %20 : vector<32x1xi1> to vector<32x1xi1>
    %57 = vector.broadcast %56 : vector<32x1xi1> to vector<32x128xi1>
    %58 = vector.broadcast %cst_18 : f32 to vector<32x128xf32>
    %59 = arith.select %57, %58, %55 : vector<32x128xi1>, vector<32x128xf32>
    %c31_i32_19 = arith.constant 31 : i32
    %60 = tpu.dynamic_rotate %54 by %c31_i32_19 dim 0 : vector<32x128xf32>, i32 -> vector<32x128xf32>
    %cst_20 = arith.constant 0.000000e+00 : f32
    %61 = vector.shape_cast %38 : vector<32x1xi1> to vector<32x1xi1>
    %62 = vector.broadcast %61 : vector<32x1xi1> to vector<32x128xi1>
    %63 = vector.broadcast %cst_20 : f32 to vector<32x128xf32>
    %64 = arith.select %62, %63, %60 : vector<32x128xi1>, vector<32x128xf32>
    %cst_21 = arith.constant 0.000000e+00 : f32
    %65 = vector.broadcast %cst_21 : f32 to vector<32x64xf32>
    %66 = tpu.concatenate %59, %54, %64, %1, %65 in 1 : vector<32x128xf32>, vector<32x128xf32>, vector<32x128xf32>, vector<32x64xf32>, vector<32x64xf32> -> vector<32x512xf32>
    %67 = arith.truncf %66 : vector<32x512xf32> to vector<32x512xbf16>
    %c0_22 = arith.constant 0 : index
    %c0_23 = arith.constant 0 : index
    %68 = vector.load %arg2[%c0_22, %c0_23] : memref<512x128xbf16, #tpu.memory_space<vmem>>, vector<512x128xbf16>
    %cst_24 = arith.constant dense<0.000000e+00> : vector<32x128xf32>
    %69 = tpu.matmul %67, %68, %cst_24 {dimension_numbers = #tpu.dot_dimension_numbers<[1], [0], [0], [1], [0, 0, 1, 1], [], []>} : vector<32x512xbf16>, vector<512x128xbf16>, vector<32x128xf32> -> vector<32x128xf32>
    %cst_25 = arith.constant 0.000000e+00 : f32
    %70 = vector.broadcast %cst_25 : f32 to vector<32x128xf32>
    %71 = arith.maximumf %69, %70 : vector<32x128xf32>
    %c0_26 = arith.constant 0 : index
    %c0_27 = arith.constant 0 : index
    %72 = vector.load %arg3[%c0_26, %c0_27] : memref<32x128xf32, #tpu.memory_space<vmem>>, vector<32x128xf32>
    tpu.vector_store %arg3[%c0_26, %c0_27], %71 {strides = array<i32>} : memref<32x128xf32, #tpu.memory_space<vmem>>, vector<32x128xf32>,
    return
  }
}

</mosaic_0001>

<bundles_post_ra>
// kernel: tpu_custom_call.1
= control target key start
LH: loop header
LB: loop body
LE: loop exit
PB: predicated region body
PF: predicated region fallthrough
CT: control target
= control target key end

     0   :  { %8 = vsyncpa [#allocation3], 0  ;;  %s1235_s0 = inlined_call_operand.hbm [shape: bf16[32,64], index: 0, kind: input, shape index: {}]   ;;  %s1236_s1 = inlined_call_operand.hbm [shape: bf16[192,128], index: 1, kind: input, shape index: {}]   ;;  %s1237_s2 = inlined_call_operand.hbm [shape: bf16[512,128], index: 2, kind: input, shape index: {}]   ;;  %s1238_s3 = inlined_call_operand.hbm [shape: f32[32,128], index: 3, kind: output, shape index: {}]  }
   0x1   :  { %9 = vsyncpa [#allocation6], 0 }
   0x2   :  { %10 = vsyncpa [#allocation4], 0  ;;  %s1044_s12 = smov [#allocation5]   ;;  %s1045_s14 = smov [#allocation2]  }
   0x3   :  { %s28_s13 = sshll.u32 %s1044_s12, 4  ;;  %s16_s15 = sshll.u32 %s1045_s14, 4  ;;  %s29_s13 = int_to_ptr.vmem [resolvable:$true] %s28_s13  ;;  %s17_s15 = int_to_ptr.vmem [resolvable:$true] %s16_s15 }
   0x4   :  { %s966_s16 = scalar_lea.vmem %s29_s13, 1536  ;;  %p971_p1 = scmp.lt.s32.totalorder %s29_s13, %s29_s13 }
   0x5   :  { %p967_p0 = scmp.ne.s32.totalorder %s29_s13, %s966_s16  ;;  %p972_p2 = scmp.lt.s32.totalorder %s966_s16, %s966_s16 }
   0x7   :  { %p973_p3 = por %p972_p2, %p971_p1 }
   0x9   :  { %p974_p4 = pnand %p973_p3, %p967_p0 }
   0xb   :  { %977 = shalt.err (!%p974_p4)
}
   0xc   :  { %s1046_s17 = smov 64   ;;  %s1047_s18 = smov 4  }
   0xd   :  { %34 = dma.hbm_to_vmem [thread:$0]  %s1236_s1, 1536, %s29_s13, [#allocation6], %s1046_s17, %s1046_s17, %s1047_s18  }
   0xe   :  { %s986_s21 = scalar_lea.vmem %s17_s15, 256  ;;  %p991_p6 = scmp.lt.s32.totalorder %s17_s15, %s17_s15 }
   0xf   :  { %p987_p5 = scmp.ne.s32.totalorder %s17_s15, %s986_s21  ;;  %p992_p7 = scmp.lt.s32.totalorder %s986_s21, %s986_s21 }
  0x11   :  { %p993_p8 = por %p992_p7, %p991_p6 }
  0x13   :  { %p994_p9 = pnand %p993_p8, %p987_p5 }
  0x15   :  { %997 = shalt.err (!%p994_p9)
}
  0x16   :  { %22 = dma.hbm_to_vmem [thread:$0]  %s1235_s0, 256, %s17_s15, [#allocation3], %s1046_s17, %s1046_s17, %s1047_s18  }
  0x17   :  { %s1048_s24 = smov [#allocation7]  }
  0x18   :  { %s40_s25 = sshll.u32 %s1048_s24, 4  ;;  %s41_s25 = int_to_ptr.vmem [resolvable:$true] %s40_s25 }
  0x19   :  { %s1006_s26 = scalar_lea.vmem %s41_s25, 4096  ;;  %p1011_p11 = scmp.lt.s32.totalorder %s41_s25, %s41_s25 }
  0x1a   :  { %p1007_p10 = scmp.ne.s32.totalorder %s41_s25, %s1006_s26  ;;  %p1012_p12 = scmp.lt.s32.totalorder %s1006_s26, %s1006_s26 }
  0x1c   :  { %p1013_p13 = por %p1012_p12, %p1011_p11 }
  0x1e   :  { %p1014_p0 = pnand %p1013_p13, %p1007_p10 }
  0x20   :  { %1017 = shalt.err (!%p1014_p0)
}
  0x21   :  { %46 = dma.hbm_to_vmem [thread:$0]  %s1237_s2, 4096, %s41_s25, [#allocation6], %s1046_s17, %s1046_s17, %s1047_s18  }
  0x22   :  { %1038 = dma.done.wait [#allocation3], 256  }
  0x23   :  { %1039 = vsyncadd [#allocation3], 4294967040 }
  0x24   :  { %1040 = dma.done.wait [#allocation6], 5632  }
  0x25   :  { %1041 = vsyncadd [#allocation6], 4294961664  ;;  %v65_v0 = vlaneseq  ;;  %v1049_v1 = vmov 0   ;;  %v1094_v5 = vld [vmem:[#allocation2] sm:$0xff]   ;;  %v1096_v6 = vld [vmem:[#allocation2 + $0x8] sm:$0xff]   ;;  %vm184_vm4 = vcmask 523264  }
  0x26   :  { %295 = vmatprep.subr.bf16.mxu0 %v1049_v1  ;;  %v61_v7 = vunpack.c.l.bf16 %v1094_v5  ;;  %v62_v8 = vunpack.c.h.bf16 %v1094_v5  ;;  %v63_v9 = vunpack.c.l.bf16 %v1096_v6  ;;  %v911_v10 = vld [vmem:[#allocation5 + $0x38] sm:$0xff]   ;;  %v64_v11 = vunpack.c.h.bf16 %v1096_v6  ;;  %v912_v18 = vld [vmem:[#allocation5 + $0x30] sm:$0xff]   ;;  %v913_v29 = vld [vmem:[#allocation5 + $0x28] sm:$0xff]   ;;  %s1051_s0 = smov [#allocation8]  }
  0x27   :  { %v1090_v2 = vshrl.u32 %v65_v0, 7  ;;  %296 = vmatpush1.bf16.msra.mxu0 %v911_v10  ;;  %v914_v37 = vld [vmem:[#allocation5 + $0x20] sm:$0xff]   ;;  %v915_v41 = vld [vmem:[#allocation5 + $0x18] sm:$0xff]   ;;  %v925_v44 = vld [vmem:[#allocation7 + $0x70] sm:$0xff]   ;;  %vm1050_vm8 = vmmov 1   ;;  %s751_s2 = sshll.u32 %s1051_s0, 4  ;;  %s752_s2 = int_to_ptr.vmem [resolvable:$true] %s751_s2 }
  0x28   :  { %v127_v14 = vrot.slane %v62_v8, 7  ;;  %v900_v15 = vpack.i.bf16 %v62_v8, %v61_v7  ;;  %v126_v16 = vrot.slane %v61_v7, 7  ;;  %v128_v17 = vrot.slane %v63_v9, 7  ;;  %297 = vmatprep.subr.bf16.mxu0 %v1049_v1  ;;  %v923_v42 = vld [vmem:[#allocation7 + $0x78] sm:$0xff]   ;;  %v916_v45 = vld [vmem:[#allocation5 + $0x10] sm:$0xff]   ;;  %v927_v47 = vld [vmem:[#allocation7 + $0x68] sm:$0xff]   ;;  %p1023_p2 = scmp.lt.s32.totalorder %s752_s2, %s752_s2 }
  0x29   :  { %v67_v3 = vadd.s32 8, %v1090_v2  ;;  %v69_v4 = vadd.s32 24, %v1090_v2  ;;  %vm151_vm0 = vcmp.lt.s32.totalorder %v1090_v2, 7  ;;  %vm130_vm1 = vcmp.lt.s32.totalorder %v1090_v2, 1  ;;  %v924_v43 = vld [vmem:[#allocation7 + $0x38] sm:$0xff]   ;;  %834 = vmatprep.subr.bf16.mxu1 %v923_v42  ;;  %v926_v46 = vld [vmem:[#allocation7 + $0x30] sm:$0xff]   ;;  %vm1205_vm12 = vmpackc.low %vm184_vm4, %vm184_vm4 }
  0x2a   :  { %v129_v19 = vrot.slane %v64_v11, 7  ;;  %v150_v20 = vrot.slane %v64_v11, 1  ;;  %901 = vrot.lane.b32.xlu0 %v900_v15, %s1046_s17  ;;  %v905_v21 = vpack.i.bf16 %v64_v11, %v63_v9  ;;  %v147_v22 = vrot.slane %v61_v7, 1  ;;  %835 = vmatpush3.bf16.msra.mxu1 %v924_v43  ;;  %v928_v48 = vld [vmem:[#allocation7 + $0x28] sm:$0xff]   ;;  %v929_v49 = vld [vmem:[#allocation7 + $0x60] sm:$0xff]   ;;  %v919_v52 = vld [vmem:[#allocation5 + $0x58] sm:$0xff]  }
  0x2b   :  { %v81_v12 = vand.u32 15, %v67_v3  ;;  %v95_v13 = vand.u32 15, %v69_v4  ;;  %v1108_v23 = vsel %vm130_vm1, %v126_v16, %v127_v14  ;;  %v1112_v24 = vsel %vm130_vm1, %v127_v14, %v128_v17  ;;  %298 = vmatpush1.bf16.msra.mxu0 %v912_v18  ;;  %836 = vmatprep.subr.bf16.mxu1 %v925_v44  ;;  %v917_v50 = vld [vmem:[#allocation5 + $0x8] sm:$0xff]   ;;  %v918_v51 = vld [vmem:[#allocation5] sm:$0xff]   ;;  %v920_v53 = vld [vmem:[#allocation5 + $0x50] sm:$0xff]   ;;  %s1018_s28 = scalar_lea.vmem %s752_s2, 512 }
  0x2c   :  { %v148_v26 = vrot.slane %v62_v8, 1  ;;  %v1120_v27 = vsel %vm130_vm1, %v129_v19, %v126_v16  ;;  %v1124_v28 = vsel %vm130_vm1, %v128_v17, %v129_v19  ;;  %v149_v30 = vrot.slane %v63_v9, 1  ;;  %299 = vmatprep.subr.bf16.mxu0 %v1049_v1  ;;  %v921_v54 = vld [vmem:[#allocation5 + $0x48] sm:$0xff]   ;;  %v922_v55 = vld [vmem:[#allocation5 + $0x40] sm:$0xff]   ;;  %v931_v15 = vld [vmem:[#allocation7 + $0x58] sm:$0xff]   ;;  %p1019_p1 = scmp.ne.s32.totalorder %s752_s2, %s1018_s28  ;;  %p1024_p3 = scmp.lt.s32.totalorder %s1018_s28, %s1018_s28 }
  0x2d   :  { %vm1114_vm2 = vcmp.eq.s32.totalorder %v81_v12, 15  ;;  %v155_v31 = vsel %vm151_vm0, %v150_v20, %v147_v22  ;;  %vm1134_vm3 = vcmp.eq.s32.totalorder %v95_v13, 15  ;;  %v74_v56 = vand.u32 15, %v1090_v2  ;;  %v930_v14 = vld [vmem:[#allocation7 + $0x20] sm:$0xff]   ;;  %v932_v16 = vld [vmem:[#allocation7 + $0x18] sm:$0xff]   ;;  %v933_v17 = vld [vmem:[#allocation7 + $0x50] sm:$0xff]  }
  0x2e   :  { %v154_v32 = vsel %vm151_vm0, %v147_v22, %v148_v26  ;;  %906 = vrot.lane.b32.xlu0 %v905_v21, %s1046_s17  ;;  %v153_v33 = vsel %vm151_vm0, %v148_v26, %v149_v30  ;;  %v152_v35 = vsel %vm151_vm0, %v149_v30, %v150_v20  ;;  %v167_v39 = vsel %vm1134_vm3, 0.0, %v155_v31  ;;  %837 = vmatpush3.bf16.msra.mxu1 %v926_v46  ;;  %v934_v18 = vld [vmem:[#allocation7 + $0x10] sm:$0xff]   ;;  %v935_v19 = vld [vmem:[#allocation7 + $0x48] sm:$0xff]   ;;  %v937_v21 = vld [vmem:[#allocation7 + $0x40] sm:$0xff]   ;;  %p1025_p4 = por %p1024_p3, %p1023_p2 }
  0x2f   :  { %v165_v36 = vsel %vm1114_vm2, 0.0, %v153_v33  ;;  %300 = vmatpush1.bf16.msra.mxu0 %v913_v29  ;;  %v192_v40 = vpack.c.bf16 %v167_v39, %v152_v35  ;;  %838 = vmatprep.subr.bf16.mxu1 %v927_v47  ;;  %v68_v57 = vadd.s32 16, %v1090_v2  ;;  %vm1156_vm5 = vcmp.eq.s32.totalorder %v74_v56, 0  ;;  %v936_v20 = vld [vmem:[#allocation7 + $0x8] sm:$0xff]   ;;  %v938_v22 = vld [vmem:[#allocation7] sm:$0xff]   ;;  %v940_v44 = vld [vmem:[#allocation7 + $0xb8] sm:$0xff]  }
  0x30   :  { %v190_v38 = vpack.c.bf16 %v165_v36, %v154_v32  ;;  %301 = vmatprep.subr.bf16.mxu0 %v1049_v1  ;;  %v143_v61 = vsel %vm1156_vm5, 0.0, %v1120_v27  ;;  %vm810_vm7 = vmneg %vm1156_vm5  ;;  %v941_v46 = vld [vmem:[#allocation7 + $0xf0] sm:$0xff]   ;;  %v947_v58 = vld [vmem:[#allocation7 + $0xd8] sm:$0xff]   ;;  %p1026_p5 = pnand %p1025_p4, %p1019_p1 }
  0x31   :  { %v88_v59 = vand.u32 15, %v68_v57  ;;  %vm811_vm9 = vmpackc.low %vm1050_vm8, %vm810_vm7  ;;  %v946_v57 = vld [vmem:[#allocation7 + $0xa0] sm:$0xff]  }
  0x32   :  { %776 = vmatprep.mubr.msk.bf16.mxu0 %vm184_vm4, %v190_v38  ;;  %839 = vmatpush3.bf16.msra.mxu1 %v928_v48  ;;  %v953_v0 = vld [vmem:[#allocation7 + $0xc0] sm:$0xff]   ;;  %vm821_vm13 = vmneg %vm1114_vm2 }
  0x33   :  { %302 = vmatpush1.bf16.msra.mxu0 %v914_v37  ;;  %840 = vmatprep.subr.bf16.mxu1 %v929_v49  ;;  %vm1163_vm6 = vcmp.eq.s32.totalorder %v88_v59, 0  ;;  %v942_v49 = vld [vmem:[#allocation7 + $0xb0] sm:$0xff]   ;;  %v948_v59 = vld [vmem:[#allocation7 + $0x98] sm:$0xff]   ;;  %vm822_vm14 = vmpackc.low %vm821_vm13, %vm1050_vm8 }
  0x34   :  { %303 = vmatprep.subr.bf16.mxu0 %v1049_v1  ;;  %v145_v8 = vsel %vm1163_vm6, 0.0, %v1112_v24  ;;  %vm814_vm10 = vmneg %vm1163_vm6 }
  0x35   :  { %vm815_vm11 = vmpackc.low %vm1050_vm8, %vm814_vm10 }
  0x36   :  { %841 = vmatpush3.bf16.msra.mxu1 %v930_v14  ;;  %vm828_vm15 = vmneg %vm1134_vm3 }
  0x37   :  { %304 = vmatpush1.bf16.msra.mxu0 %v915_v41  ;;  %842 = vmatprep.subr.bf16.mxu1 %v931_v15 }
  0x38   :  { %305 = vmatprep.subr.bf16.mxu0 %v1049_v1 }
  0x3a   :  { %843 = vmatpush3.bf16.msra.mxu1 %v932_v16 }
  0x3b   :  { %306 = vmatpush1.bf16.msra.mxu0 %v916_v45  ;;  %844 = vmatprep.subr.bf16.mxu1 %v933_v17 }
  0x3c   :  { %307 = vmatprep.subr.bf16.mxu0 %v1049_v1 }
  0x3e   :  { %845 = vmatpush3.bf16.msra.mxu1 %v934_v18 }
  0x3f   :  { %308 = vmatpush1.bf16.msra.mxu0 %v917_v50  ;;  %846 = vmatprep.subr.bf16.mxu1 %v935_v19  ;;  %v943_v50 = vld [vmem:[#allocation7 + $0xe8] sm:$0xff]  }
  0x40   :  { %309 = vmatprep.subr.bf16.mxu0 %v1049_v1 }
  0x42   :  { %847 = vmatpush3.bf16.msra.mxu1 %v936_v20 }
  0x43   :  { %310 = vmatpush1.bf16.msra.mxu0 %v918_v51  ;;  %848 = vmatprep.subr.bf16.mxu1 %v937_v21 }
  0x44   :  { %319 = vmatprep.subr.bf16.mxu0 %v1049_v1 }
  0x46   :  { %849 = vmatpush3.bf16.msra.mxu1 %v938_v22 }
  0x47   :  { %320 = vmatpush2.bf16.msra.mxu0 %v919_v52 }
  0x48   :  { %321 = vmatprep.subr.bf16.mxu0 %v1049_v1 }
  0x4b   :  { %322 = vmatpush2.bf16.msra.mxu0 %v920_v53  ;;  %v944_v53 = vld [vmem:[#allocation7 + $0xa8] sm:$0xff]  }
  0x4c   :  { %323 = vmatprep.subr.bf16.mxu0 %v1049_v1 }
  0x4f   :  { %324 = vmatpush2.bf16.msra.mxu0 %v921_v54 }
  0x50   :  { %325 = vmatprep.subr.bf16.mxu0 %v1049_v1 }
  0x53   :  { %326 = vmatpush2.bf16.msra.mxu0 %v922_v55  ;;  %v945_v55 = vld [vmem:[#allocation7 + $0xe0] sm:$0xff]  }
  0x9c   :  { %v902_v60 = vpop.permute.xlu0 %901 }
  0x9d   :  { %v904_v62 = vunpack.i.h.bf16 %v902_v60  ;;  %v903_v63 = vunpack.i.l.bf16 %v902_v60  ;;  %v949_v60 = vld [vmem:[#allocation7 + $0xd0] sm:$0xff]  }
  0x9f   :  { %v185_v1 = vsel %vm184_vm4, %v143_v61, %v903_v63  ;;  %v186_v3 = vsel %vm184_vm4, %v1108_v23, %v904_v62  ;;  %v939_v23 = vld [vmem:[#allocation7 + $0xf8] sm:$0xff]   ;;  %v950_v61 = vld [vmem:[#allocation7 + $0x90] sm:$0xff]   ;;  %v951_v62 = vld [vmem:[#allocation7 + $0xc8] sm:$0xff]  }
  0xa0   :  { %v189_v4 = vpack.c.bf16 %v186_v3, %v185_v1  ;;  %v907_v7 = vpop.permute.xlu0 %906  ;;  %862 = vmatprep.subr.bf16.mxu1 %v939_v23  ;;  %v952_v63 = vld [vmem:[#allocation7 + $0x88] sm:$0xff]  }
  0xa1   :  { %v909_v9 = vunpack.i.h.bf16 %v907_v7  ;;  %v908_v10 = vunpack.i.l.bf16 %v907_v7 }
  0xa2   :  { %328 = vmatmul.mubr.bf16.vlgmr.msra.gmra.mxu0 %v189_v4  ;;  %v954_v4 = vld [vmem:[#allocation7 + $0x80] sm:$0xff]  }
  0xa3   :  { %777 = vmatprep.mubr.msk.bf16.mxu0 %vm184_vm4, %v192_v40  ;;  %v187_v11 = vsel %vm184_vm4, %v145_v8, %v908_v10  ;;  %v188_v12 = vsel %vm184_vm4, %v1124_v28, %v909_v9 }
  0xa4   :  { %v191_v13 = vpack.c.bf16 %v188_v12, %v187_v11 }
  0xaa   :  { %336 = vmatmul.mubr.bf16.gmra.mxu0 %v191_v13 }
 0x162   :  { %v329_v24 = vpop.f32.mrf.mxu0 }
 0x163   :  { %v1177_v28 = vmax.f32 %v329_v24, 0.0 }
 0x164   :  { %v331_v26 = vpop.f32.mrf.mxu0 }
 0x165   :  { %v348_v39 = vrot.slane %v1177_v28, 7 }
 0x166   :  { %v332_v27 = vpop.f32.mrf.mxu0 }
 0x167   :  { %v1179_v29 = vmax.f32 %v332_v27, 0.0 }
 0x168   :  { %v334_v30 = vpop.f32.mrf.mxu0 }
 0x169   :  { %v377_v31 = vpack.c.bf16 %v1179_v29, %v1177_v28  ;;  %v349_v36 = vrot.slane %v1179_v29, 7  ;;  %v361_v3 = vrot.slane %v1179_v29, 1 }
 0x16a   :  { %v337_v32 = vpop.f32.mrf.mxu0 }
 0x16b   :  { %672 = vmatprep.mubr.bf16.mxu1 %v377_v31  ;;  %v346_v41 = vmax.f32 %v337_v32, 0.0  ;;  %v354_v42 = vsel %vm130_vm1, %v348_v39, %v349_v36 }
 0x16c   :  { %v339_v33 = vpop.f32.mrf.mxu0 }
 0x16d   :  { %v350_v48 = vrot.slane %v346_v41, 7  ;;  %v362_v1 = vrot.slane %v346_v41, 1 }
 0x16e   :  { %v340_v35 = vpop.f32.mrf.mxu0 }
 0x16f   :  { %v1184_v37 = vmax.f32 %v340_v35, 0.0  ;;  %v353_v52 = vsel %vm130_vm1, %v349_v36, %v350_v48  ;;  %v365_v7 = vsel %vm151_vm0, %v361_v3, %v362_v1 }
 0x170   :  { %v342_v38 = vpop.f32.mrf.mxu0 }
 0x171   :  { %v351_v40 = vrot.slane %v1184_v37, 7  ;;  %v381_v47 = vpack.c.bf16 %v1184_v37, %v346_v41  ;;  %v363_v10 = vrot.slane %v1184_v37, 1 }
 0x173   :  { %v355_v43 = vsel %vm130_vm1, %v351_v40, %v348_v39  ;;  %v352_v51 = vsel %vm130_vm1, %v350_v48, %v351_v40  ;;  %v364_v25 = vsel %vm151_vm0, %v362_v1, %v363_v10  ;;  %vm829_vm1 = vmpackc.low %vm828_vm15, %vm1050_vm8 }
 0x174   :  { %v812_v45 = vpack.c.bf16 %v354_v42, %v355_v43  ;;  %v816_v54 = vpack.c.bf16 %v352_v51, %v353_v52 }
 0x176   :  { %813 = vmatmul.mubr.msk.bf16.vlgmr.msra.gmra.mxu1 %vm811_vm9, %v812_v45 }
 0x177   :  { %863 = vmatpush3.bf16.msra.mxu1 %v940_v44  ;;  %680 = vmatprep.mubr.bf16.mxu1 %v381_v47 }
 0x178   :  { %864 = vmatprep.subr.bf16.mxu1 %v941_v46 }
 0x17b   :  { %865 = vmatpush3.bf16.msra.mxu1 %v942_v49 }
 0x17c   :  { %866 = vmatprep.subr.bf16.mxu1 %v943_v50 }
 0x17e   :  { %817 = vmatmul.mubr.msk.bf16.gmra.mxu1 %vm815_vm11, %v816_v54 }
 0x17f   :  { %867 = vmatpush3.bf16.msra.mxu1 %v944_v53  ;;  %820 = vmatprep.mubr.msk.bf16.mxu1 %vm1205_vm12, %v1094_v5  ;;  %v360_v5 = vrot.slane %v1177_v28, 1 }
 0x180   :  { %868 = vmatprep.subr.bf16.mxu1 %v945_v55 }
 0x181   :  { %v366_v8 = vsel %vm151_vm0, %v360_v5, %v361_v3  ;;  %v367_v11 = vsel %vm151_vm0, %v363_v10, %v360_v5 }
 0x182   :  { %v823_v9 = vpack.c.bf16 %v365_v7, %v366_v8  ;;  %v830_v12 = vpack.c.bf16 %v367_v11, %v364_v25 }
 0x183   :  { %869 = vmatpush3.bf16.msra.mxu1 %v946_v57 }
 0x184   :  { %870 = vmatprep.subr.bf16.mxu1 %v947_v58 }
 0x187   :  { %871 = vmatpush3.bf16.msra.mxu1 %v948_v59 }
 0x188   :  { %872 = vmatprep.subr.bf16.mxu1 %v949_v60 }
 0x18b   :  { %873 = vmatpush3.bf16.msra.mxu1 %v950_v61 }
 0x18c   :  { %874 = vmatprep.subr.bf16.mxu1 %v951_v62 }
 0x18f   :  { %875 = vmatpush3.bf16.msra.mxu1 %v952_v63 }
 0x190   :  { %876 = vmatprep.subr.bf16.mxu1 %v953_v0 }
 0x193   :  { %877 = vmatpush3.bf16.msra.mxu1 %v954_v4 }
 0x196   :  { %824 = vmatmul.mubr.msk.bf16.vlgmr.msra.gmra.mxu1 %vm822_vm14, %v823_v9 }
 0x197   :  { %827 = vmatprep.mubr.msk.bf16.mxu1 %vm1205_vm12, %v1096_v6 }
 0x19e   :  { %831 = vmatmul.mubr.msk.bf16.gmra.mxu1 %vm829_vm1, %v830_v12 }
 0x236   :  { %v850_v13 = vpop.f32.mrf.mxu1 }
 0x238   :  { %v851_v14 = vpop.f32.mrf.mxu1 }
 0x239   :  { %v852_v21 = vadd.f32 %v851_v14, %v850_v13 }
 0x23a   :  { %v853_v15 = vpop.f32.mrf.mxu1 }
 0x23c   :  { %v854_v16 = vpop.f32.mrf.mxu1 }
 0x23d   :  { %v855_v26 = vadd.f32 %v854_v16, %v853_v15 }
 0x23e   :  { %v856_v17 = vpop.f32.mrf.mxu1 }
 0x240   :  { %v857_v18 = vpop.f32.mrf.mxu1 }
 0x241   :  { %v858_v32 = vadd.f32 %v857_v18, %v856_v17 }
 0x242   :  { %v859_v6 = vpop.f32.mrf.mxu1 }
 0x244   :  { %v860_v19 = vpop.f32.mrf.mxu1 }
 0x245   :  { %v861_v39 = vadd.f32 %v860_v19, %v859_v6 }
 0x256   :  { %v878_v34 = vpop.f32.mrf.mxu1 }
 0x258   :  { %v879_v20 = vpop.f32.mrf.mxu1 }
 0x259   :  { %v880_v22 = vadd.f32 %v879_v20, %v878_v34 }
 0x25a   :  { %v881_v23 = vpop.f32.mrf.mxu1 }
 0x25b   :  { %v724_v24 = vadd.f32 %v880_v22, %v852_v21 }
 0x25c   :  { %v882_v2 = vpop.f32.mrf.mxu1 }
 0x25d   :  { %v738_v27 = vmax.f32 %v724_v24, 0.0  ;;  %v883_v28 = vadd.f32 %v882_v2, %v881_v23 }
 0x25e   :  { %v884_v29 = vpop.f32.mrf.mxu1 }
 0x25f   :  { %742 = vst [vmem:[#allocation8] sm:$0xff] %v738_v27  ;;  %v727_v30 = vadd.f32 %v883_v28, %v855_v26 }
 0x260   :  { %v885_v31 = vpop.f32.mrf.mxu1 }
 0x261   :  { %v739_v33 = vmax.f32 %v727_v30, 0.0  ;;  %v886_v35 = vadd.f32 %v885_v31, %v884_v29 }
 0x262   :  { %v887_v36 = vpop.f32.mrf.mxu1 }
 0x263   :  { %743 = vst [vmem:[#allocation8 + $0x8] sm:$0xff] %v739_v33  ;;  %v732_v37 = vadd.f32 %v886_v35, %v858_v32 }
 0x264   :  { %v888_v38 = vpop.f32.mrf.mxu1 }
 0x265   :  { %v740_v40 = vmax.f32 %v732_v37, 0.0  ;;  %v889_v41 = vadd.f32 %v888_v38, %v887_v36 }
 0x267   :  { %744 = vst [vmem:[#allocation8 + $0x10] sm:$0xff] %v740_v40  ;;  %v735_v42 = vadd.f32 %v889_v41, %v861_v39 }
 0x269   :  { %v741_v43 = vmax.f32 %v735_v42, 0.0 }
 0x26b   :  { %745 = vst [vmem:[#allocation8 + $0x18] sm:$0xff] %v741_v43 }
 0x26c   :  { %1029 = shalt.err (!%p1026_p5)
}
 0x26d   :  { %s1052_s29 = smov 128   ;;  %s1053_s30 = smov 8  }
 0x26e   :  { %757 = dma.vmem_to_hbm [thread:$0]  %s752_s2, 512, %s1238_s3, [#allocation4], %s1052_s29, %s1052_s29, %s1053_s30  }
 0x26f   :  { %1042 = dma.done.wait [#allocation4], 512  }
 0x270   :  { %1043 = vsyncadd [#allocation4], 4294966784 }
 0x271   :  { %761 = vsyncpa [#allocation3], 1 }
 0x272   :  { %762 = vsyncpa [#allocation6], 1 }
 0x273   :  { %763 = vsyncpa [#allocation4], 1 }

</bundles_post_ra>
